<compile_context>
chip_gen: v5e
topology: v5e:2x2
jax: 0.10.0
libtpu: 0.0.40
codegen_flags: <defaults>
</compile_context>

<pallas_src>
import functools

import jax
import jax.numpy as jnp
from jax.experimental import pallas as pl
from jax.experimental.pallas import tpu as pltpu


def _round_up(a, m):
    return -(-a // m) * m


def _mbstd_kernel(xr_ref, out_ref, copy_sem, *, CHW, HW, use_dma_passthrough):
    # xr_ref : (G, TM, C*H*W)        one tile of member rows across all groups
    # out_ref: (G, TM, (C+1)*H*W)    [ x pass-through | stat broadcast over H*W ]
    G, TM = xr_ref.shape[0], xr_ref.shape[1]

    if use_dma_passthrough:
        # Offload the pass-through copy to the DMA engine: frees vld/vst slots
        # for the stat math and overlaps copy with compute.  Only taken when
        # CHW % 128 == 0 so the destination window is lane-tile aligned.
        cp = pltpu.make_async_copy(xr_ref, out_ref.at[:, :, 0:CHW], copy_sem.at[0])
        cp.start()

    x = xr_ref[...]                                   # single vreg load, reused
    xf = x if x.dtype == jnp.float32 else x.astype(jnp.float32)

    # Single-pass moments over the group axis (fewer VALU passes than
    # mean -> (x-mean)^2 -> mean; matters once HBM BW stops hiding the VPU).
    inv_g = jnp.float32(1.0 / G)
    s1 = jnp.sum(xf, axis=0)                          # (TM, CHW)
    s2 = jnp.sum(xf * xf, axis=0)                     # (TM, CHW)
    mean = s1 * inv_g
    var = jnp.maximum(s2 * inv_g - mean * mean, 0.0)  # biased var, clamped >= 0
    std = jnp.sqrt(var + 1e-8)                        # (TM, CHW)
    stat = jnp.mean(std, axis=-1, keepdims=True)      # (TM, 1): mean over C,H,W

    # Broadcast the per-member scalar into the extra channel (lane-dense slab).
    out_ref[:, :, CHW:] = jnp.broadcast_to(
        stat[None, :, :], (G, TM, HW)
    ).astype(out_ref.dtype)

    if use_dma_passthrough:
        cp.wait()
    else:
        out_ref[:, :, :CHW] = x.astype(out_ref.dtype)


def minibatch_stddev(x, group_size=4):
    B, C, H, W = x.shape
    G = min(group_size, B) if B % group_size == 0 else 1
    M = B // G
    HW = H * W
    CHW = C * HW
    OCHW = (C + 1) * HW
    itemsize = jnp.dtype(x.dtype).itemsize

    # VMEM capacity: 128 MiB on v5e/v6e, 64 MiB on v7x.  Keep the
    # double-buffered (in + out) blocks well below it.
    try:
        vmem_cap = int(pltpu.get_tpu_info().vmem_capacity_bytes)
    except Exception:  # pragma: no cover - conservative fallback (v7x-sized)
        vmem_cap = 64 << 20
    vmem_budget = min(vmem_cap // 2, 48 << 20)

    # Padding-aware footprint: the last two block dims are physically tiled
    # (8, 128) in VMEM.
    chw_pad = _round_up(CHW, 128)
    ochw_pad = _round_up(OCHW, 128)
    row_bytes8 = G * 8 * (chw_pad + ochw_pad) * itemsize   # 8 member rows, in+out

    # Member-tile TM: a multiple of 8 (unmasked sublane tiles) whose
    # double-buffered in+out blocks fit the VMEM budget, capped so the grid has
    # >= 2 steps when M allows (v7x has 2 TensorCores on the "parallel" axis).
    if M <= 8:
        TM = M                                    # full second-minor dim: always legal
    else:
        tm_vmem = max(8, (vmem_budget // (2 * row_bytes8)) * 8)
        tm_two_steps = ((M - 1) // 8) * 8         # largest mult of 8 leaving >= 2 steps
        TM = max(8, min(tm_vmem, tm_two_steps))
    # TODO(synk): if even TM=8 exceeds VMEM for extreme CHW, add an inner CHW
    # tile axis ("arbitrary") with a scratch accumulator for the stat reduction.

    num_steps = pl.cdiv(M, TM)                    # partial last block allowed

    in_block_pad = G * _round_up(TM, 8) * chw_pad * itemsize
    out_block_pad = G * _round_up(TM, 8) * ochw_pad * itemsize
    vmem_limit = min(
        vmem_cap, max(2 * (in_block_pad + out_block_pad) + (4 << 20), 16 << 20)
    )

    # Lane-tile-aligned pass-through slab -> DMA-engine copy; vector-store
    # fallback otherwise (standard ProGAN stages have CHW % 128 == 0).
    use_dma_passthrough = (CHW % 128 == 0)

    # Glue: (B, C, H, W) -> (G, M, C*H*W); b -> (b // M, b % M), identical to
    # torch's x.view(G, -1, C, H, W) ordering.
    xr = x.reshape(G, M, CHW)

    kernel = functools.partial(
        _mbstd_kernel, CHW=CHW, HW=HW, use_dma_passthrough=use_dma_passthrough
    )

    cost = pl.CostEstimate(
        flops=4 * B * CHW,                               # sum / sum-sq / var / scale
        transcendentals=M * CHW,                         # sqrt per (m, c, h, w)
        bytes_accessed=(B * CHW + B * OCHW) * itemsize,  # HBM read + write
    )

    out = pl.pallas_call(
        kernel,
        out_shape=jax.ShapeDtypeStruct((G, M, OCHW), x.dtype),
        grid=(num_steps,),
        in_specs=[pl.BlockSpec((G, TM, CHW), lambda i: (0, i, 0))],
        out_specs=pl.BlockSpec((G, TM, OCHW), lambda i: (0, i, 0)),
        scratch_shapes=[pltpu.SemaphoreType.DMA((1,))],
        compiler_params=pltpu.CompilerParams(
            dimension_semantics=("parallel",),
            vmem_limit_bytes=int(vmem_limit),
        ),
        cost_estimate=cost,
    )(xr)

    # TODO(synk): if downstream can consume (x, stat) separately, emit only the
    # per-member stat and skip the pass-through — halves HBM traffic for this
    # purely bandwidth-bound op.

    # (G, M, (C+1)*H*W) -> (B, C+1, H, W); b = g*M + m, matching torch's
    # view/cat batch ordering.
    return out.reshape(B, C + 1, H, W)


def minibatch_stddev_ref(x, group_size=4):
    """Pure-JAX reference mirroring the PyTorch module."""
    B, C, H, W = x.shape
    G = min(group_size, B) if B % group_size == 0 else 1
    y = x.reshape(G, -1, C, H, W)
    y = y - jnp.mean(y, axis=0, keepdims=True)
    y = jnp.mean(jnp.square(y), axis=0)
    y = jnp.sqrt(y + 1e-8)
    y = jnp.mean(y, axis=(1, 2, 3), keepdims=True)           # (B//G, 1, 1, 1)
    y = jnp.tile(y, (G, 1, H, W))                             # (B, 1, H, W)
    return jnp.concatenate([x, y], axis=1)


if __name__ == "__main__":
    root = jax.random.PRNGKey(0)
    k1, k2, k3 = jax.random.split(root, 3)

    # Standard path: group_size=4 -> G=4, M=2 (TM == M, one grid step).
    x = jax.random.normal(k1, (8, 4, 16, 16), dtype=jnp.float32)
    out = jax.block_until_ready(minibatch_stddev(x, group_size=4))
    ref = minibatch_stddev_ref(x, group_size=4)
    assert out.shape == (8, 5, 16, 16)
    assert jnp.allclose(out, ref, atol=1e-5, rtol=1e-5), "mismatch (G=4 path)"

    # B % group_size != 0 -> G=1 path.
    x2 = jax.random.normal(k2, (6, 4, 16, 16), dtype=jnp.float32)
    out2 = jax.block_until_ready(minibatch_stddev(x2, group_size=4))
    ref2 = minibatch_stddev_ref(x2, group_size=4)
    assert jnp.allclose(out2, ref2, atol=1e-5, rtol=1e-5), "mismatch (G=1 path)"

    # M = 9 (not a multiple of 8): TM=8, grid=2 with a partial last block.
    x3 = jax.random.normal(k3, (36, 4, 16, 16), dtype=jnp.float32)
    out3 = jax.block_until_ready(minibatch_stddev(x3, group_size=4))
    ref3 = minibatch_stddev_ref(x3, group_size=4)
    assert jnp.allclose(out3, ref3, atol=1e-5, rtol=1e-5), "mismatch (partial block)"

    print("KERNEL_OK")
</pallas_src>

<mosaic_0001>
module attributes {stable_mosaic.version = 11 : i64} {
  func.func @_mbstd_kernel(%arg0: i32, %arg1: memref<4x2x1024xf32, #tpu.memory_space<vmem>>, %arg2: memref<4x2x1280xf32, #tpu.memory_space<vmem>>, %arg3: memref<1x!tpu.dma_semaphore, #tpu.memory_space<semaphore_mem>>) attributes {dimension_semantics = [#tpu.dimension_semantics<parallel>], iteration_bounds = array<i64: 1>, scalar_prefetch = 0 : i64, scratch_operands = 1 : i64, tpu.core_type = #tpu.core_type<tc>, window_params = [{transform_indices = @transform_0, window_bounds = array<i64: 4, 2, 1024>}, {transform_indices = @transform_1, window_bounds = array<i64: 4, 2, 1280>}]} {
    %c0_i32 = arith.constant 0 : i32
    %c0_i32_0 = arith.constant 0 : i32
    %c0_i32_1 = arith.constant 0 : i32
    %c0_i32_2 = arith.constant 0 : i32
    %0 = tpu.memref_slice %arg2[%c0_i32_0, %c0_i32_1, %c0_i32_2] : memref<4x2x1280xf32, #tpu.memory_space<vmem>> -> memref<4x2x1024xf32, #tpu.memory_space<vmem>>
    %1 = tpu.memref_slice %arg3[%c0_i32] : memref<1x!tpu.dma_semaphore, #tpu.memory_space<semaphore_mem>> -> memref<1x!tpu.dma_semaphore, #tpu.memory_space<semaphore_mem>>
    %2 = tpu.memref_squeeze %1 : memref<1x!tpu.dma_semaphore, #tpu.memory_space<semaphore_mem>> -> memref<!tpu.dma_semaphore, #tpu.memory_space<semaphore_mem>>
    tpu.enqueue_dma source(%arg1 : memref<4x2x1024xf32, #tpu.memory_space<vmem>>) target(%0 : memref<4x2x1024xf32, #tpu.memory_space<vmem>>) target_semaphore(%2 : memref<!tpu.dma_semaphore, #tpu.memory_space<semaphore_mem>>)
    %c0 = arith.constant 0 : index
    %c0_3 = arith.constant 0 : index
    %c0_4 = arith.constant 0 : index
    %3 = vector.load %arg1[%c0, %c0_3, %c0_4] : memref<4x2x1024xf32, #tpu.memory_space<vmem>>, vector<4x2x1024xf32>
    %cst = arith.constant dense<0.000000e+00> : vector<2x1024xf32>
    %4 = vector.multi_reduction <add>, %3, %cst [0] : vector<4x2x1024xf32> to vector<2x1024xf32>
    %5 = arith.mulf %3, %3 : vector<4x2x1024xf32>
    %cst_5 = arith.constant dense<0.000000e+00> : vector<2x1024xf32>
    %6 = vector.multi_reduction <add>, %5, %cst_5 [0] : vector<4x2x1024xf32> to vector<2x1024xf32>
    %cst_6 = arith.constant 2.500000e-01 : f32
    %7 = vector.broadcast %cst_6 : f32 to vector<2x1024xf32>
    %8 = arith.mulf %4, %7 : vector<2x1024xf32>
    %cst_7 = arith.constant 2.500000e-01 : f32
    %9 = vector.broadcast %cst_7 : f32 to vector<2x1024xf32>
    %10 = arith.mulf %6, %9 : vector<2x1024xf32>
    %11 = arith.mulf %8, %8 : vector<2x1024xf32>
    %12 = arith.subf %10, %11 : vector<2x1024xf32>
    %cst_8 = arith.constant 0.000000e+00 : f32
    %13 = vector.broadcast %cst_8 : f32 to vector<2x1024xf32>
    %14 = arith.maximumf %12, %13 : vector<2x1024xf32>
    %cst_9 = arith.constant 9.99999993E-9 : f32
    %15 = vector.broadcast %cst_9 : f32 to vector<2x1024xf32>
    %16 = arith.addf %14, %15 : vector<2x1024xf32>
    %17 = math.sqrt %16 : vector<2x1024xf32>
    %cst_10 = arith.constant dense<0.000000e+00> : vector<2xf32>
    %18 = vector.multi_reduction <add>, %17, %cst_10 [1] : vector<2x1024xf32> to vector<2xf32>
    %19 = vector.shape_cast %18 : vector<2xf32> to vector<2x1xf32>
    %cst_11 = arith.constant 1.024000e+03 : f32
    %20 = vector.broadcast %cst_11 : f32 to vector<2x1xf32>
    %21 = arith.divf %19, %20 : vector<2x1xf32>
    %22 = vector.shape_cast %21 : vector<2x1xf32> to vector<1x2x1xf32>
    %23 = vector.shape_cast %22 : vector<1x2x1xf32> to vector<1x2x1xf32>
    %24 = vector.broadcast %23 : vector<1x2x1xf32> to vector<4x2x256xf32>
    %c0_12 = arith.constant 0 : index
    %c0_13 = arith.constant 0 : index
    %c1024 = arith.constant 1024 : index
    %25 = vector.load %arg2[%c0_12, %c0_13, %c1024] : memref<4x2x1280xf32, #tpu.memory_space<vmem>>, vector<4x2x256xf32>
    tpu.vector_store %arg2[%c0_12, %c0_13, %c1024], %24 {strides = array<i32>} : memref<4x2x1280xf32, #tpu.memory_space<vmem>>, vector<4x2x256xf32>,
    %c0_i32_14 = arith.constant 0 : i32
    %c0_i32_15 = arith.constant 0 : i32
    %c0_i32_16 = arith.constant 0 : i32
    %c0_i32_17 = arith.constant 0 : i32
    %26 = tpu.memref_slice %arg2[%c0_i32_15, %c0_i32_16, %c0_i32_17] : memref<4x2x1280xf32, #tpu.memory_space<vmem>> -> memref<4x2x1024xf32, #tpu.memory_space<vmem>>
    %27 = tpu.memref_slice %arg3[%c0_i32_14] : memref<1x!tpu.dma_semaphore, #tpu.memory_space<semaphore_mem>> -> memref<1x!tpu.dma_semaphore, #tpu.memory_space<semaphore_mem>>
    %28 = tpu.memref_squeeze %27 : memref<1x!tpu.dma_semaphore, #tpu.memory_space<semaphore_mem>> -> memref<!tpu.dma_semaphore, #tpu.memory_space<semaphore_mem>>
    tpu.wait_dma2 semaphore(%28 : memref<!tpu.dma_semaphore, #tpu.memory_space<semaphore_mem>>) src(%arg1 : memref<4x2x1024xf32, #tpu.memory_space<vmem>>) dst(%26 : memref<4x2x1024xf32, #tpu.memory_space<vmem>>)
    return
  }
  func.func @transform_0(%arg0: i32) -> (i32, i32, i32) {
    %c0_i32 = arith.constant 0 : i32
    %c0_i32_0 = arith.constant 0 : i32
    %c0_i32_1 = arith.constant 0 : i32
    return %c0_i32, %arg0, %c0_i32_0 : i32, i32, i32
  }
  func.func @transform_1(%arg0: i32) -> (i32, i32, i32) {
    %c0_i32 = arith.constant 0 : i32
    %c0_i32_0 = arith.constant 0 : i32
    %c0_i32_1 = arith.constant 0 : i32
    return %c0_i32, %arg0, %c0_i32_0 : i32, i32, i32
  }
}

</mosaic_0001>

<bundles_post_ra>
// kernel: tpu_custom_call.1
= control target key start
LH: loop header
LB: loop body
LE: loop exit
PB: predicated region body
PF: predicated region fallthrough
CT: control target
= control target key end

     0   :  { %6 = vsyncpa [#allocation4], 0  ;;  %s900_s0 = inlined_call_operand.hbm [shape: f32[4,2,1024], index: 0, kind: input, shape index: {}]   ;;  %s901_s1 = inlined_call_operand.hbm [shape: f32[4,2,1280], index: 1, kind: output, shape index: {}]  }
   0x1   :  { %7 = vsyncpa [#allocation5], 0  ;;  %s12_s8 = sshll.u32 %s900_s0, 4  ;;  %s642_s9 = smov [#allocation3]   ;;  %s13_s8 = int_to_ptr.hbm [resolvable:$true] %s12_s8 }
   0x2   :  { %s14_s10 = sshll.u32 %s642_s9, 4  ;;  %s643_s11 = smov 256   ;;  %s15_s10 = int_to_ptr.vmem [resolvable:$true] %s14_s10 }
   0x3   :  { %s644_s12 = smov 16  }
   0x4   :  { %20 = dma.hbm_to_vmem [thread:$0]  %s13_s8, 1024, %s15_s10, [#allocation4], %s643_s11, %s643_s11, %s644_s12  }
   0x5   :  { %636 = dma.done.wait [#allocation4], 1024  }
   0x6   :  { %637 = vsyncadd [#allocation4], 4294966272  ;;  %v35_v0 = vld [vmem:[#allocation3] sm:$0xff]  ;;  %v37_v1 = vld [vmem:[#allocation3 + $0x8] sm:$0xff] }
   0x7   :  { %v39_v2 = vld [vmem:[#allocation3 + $0x10] sm:$0xff]  ;;  %36 = vst [vmem:[#allocation6] sm:$0xff] %v35_v0  ;;  %v41_v3 = vld [vmem:[#allocation3 + $0x18] sm:$0xff]  ;;  %v43_v4 = vld [vmem:[#allocation3 + $0x20] sm:$0xff] }
   0x8   :  { %38 = vst [vmem:[#allocation6 + $0x8] sm:$0xff] %v37_v1  ;;  %v45_v5 = vld [vmem:[#allocation3 + $0x28] sm:$0xff]  ;;  %v47_v6 = vld [vmem:[#allocation3 + $0x30] sm:$0xff]  ;;  %v49_v7 = vld [vmem:[#allocation3 + $0x38] sm:$0xff] }
   0x9   :  { %40 = vst [vmem:[#allocation6 + $0x14] sm:$0xff] %v39_v2 }
   0xa   :  { %42 = vst [vmem:[#allocation6 + $0x1c] sm:$0xff] %v41_v3 }
   0xb   :  { %44 = vst [vmem:[#allocation6 + $0x28] sm:$0xff] %v43_v4 }
   0xc   :  { %46 = vst [vmem:[#allocation6 + $0x30] sm:$0xff] %v45_v5 }
   0xd   :  { %48 = vst [vmem:[#allocation6 + $0x3c] sm:$0xff] %v47_v6 }
   0xe   :  { %50 = vst [vmem:[#allocation6 + $0x44] sm:$0xff] %v49_v7 }
   0xf   :  { %56 = vsyncadd [#allocation2], 1024  ;;  %v57_v8 = vld [vmem:[#allocation3] sm:$0xff]  ;;  %v58_v9 = vld [vmem:[#allocation3 + $0x8] sm:$0xff]  ;;  %vm146_vm0 = vcmask 1041408  }
  0x10   :  { %73 = vst [vmem:[#allocation1] ss:$4 sm:$0xff] %v57_v8  ;;  %v663_v10 = vld [vmem:[#allocation3 + $0x10] sm:$0xff]  ;;  %v665_v11 = vld [vmem:[#allocation3 + $0x18] sm:$0xff]  ;;  %v673_v20 = vld [vmem:[#allocation3 + $0x20] sm:$0xff]  ;;  %v203_v52 = vmul.f32 %v57_v8, %v57_v8  ;;  %v204_v55 = vmul.f32 %v58_v9, %v58_v9 }
  0x11   :  { %75 = vst [vmem:[#allocation1 + $0x20] ss:$4 sm:$0xff] %v58_v9  ;;  %v675_v21 = vld [vmem:[#allocation3 + $0x28] sm:$0xff]  ;;  %v683_v30 = vld [vmem:[#allocation3 + $0x30] sm:$0xff]  ;;  %v689_v35 = vld [vmem:[#allocation3 + $0x38] sm:$0xff]  ;;  %v205_v0 = vmul.f32 %v663_v10, %v663_v10  ;;  %v206_v3 = vmul.f32 %v665_v11, %v665_v11 }
  0x17   :  { %v76_v12 = vld.sshfl [vmem:[#allocation1] sm:$0xff pattern:$0x73625140]  ;;  %v77_v13 = vld.sshfl [vmem:[#allocation1 + $0x8] sm:$0xff pattern:$0x73625140] }
  0x18   :  { %v78_v14 = vld.sshfl [vmem:[#allocation1 + $0x10] sm:$0xff pattern:$0x73625140]  ;;  %v79_v15 = vld.sshfl [vmem:[#allocation1 + $0x18] sm:$0xff pattern:$0x73625140] }
  0x19   :  { %v667_v16 = vld.sshfl [vmem:[#allocation1 + $0x20] sm:$0xff pattern:$0x73625140]  ;;  %v669_v17 = vld.sshfl [vmem:[#allocation1 + $0x28] sm:$0xff pattern:$0x73625140] }
  0x1a   :  { %v82_v18 = vld.sshfl [vmem:[#allocation1 + $0x30] sm:$0xff pattern:$0x73625140]  ;;  %v83_v19 = vld.sshfl [vmem:[#allocation1 + $0x38] sm:$0xff pattern:$0x73625140] }
  0x1b   :  { %84 = vst [vmem:[#allocation1] ss:$4 sm:$0xff] %v663_v10  ;;  %v189_v31 = vsel %vm146_vm0, %v82_v18, 0.0  ;;  %v196_v33 = vsel %vm146_vm0, %v83_v19, 0.0  ;;  %v147_v60 = vsel %vm146_vm0, %v76_v12, 0.0  ;;  %v154_v61 = vsel %vm146_vm0, %v77_v13, 0.0 }
  0x1c   :  { %85 = vst [vmem:[#allocation1 + $0x20] ss:$4 sm:$0xff] %v665_v11  ;;  %v161_v62 = vsel %vm146_vm0, %v78_v14, 0.0  ;;  %v168_v63 = vsel %vm146_vm0, %v79_v15, 0.0  ;;  %v175_v10 = vsel %vm146_vm0, %v667_v16, 0.0  ;;  %v182_v11 = vsel %vm146_vm0, %v669_v17, 0.0 }
  0x22   :  { %v86_v22 = vld.sshfl [vmem:[#allocation1] sm:$0xff pattern:$0x73625140]  ;;  %v87_v23 = vld.sshfl [vmem:[#allocation1 + $0x8] sm:$0xff pattern:$0x73625140] }
  0x23   :  { %v88_v24 = vld.sshfl [vmem:[#allocation1 + $0x10] sm:$0xff pattern:$0x73625140]  ;;  %v89_v25 = vld.sshfl [vmem:[#allocation1 + $0x18] sm:$0xff pattern:$0x73625140] }
  0x24   :  { %v677_v26 = vld.sshfl [vmem:[#allocation1 + $0x20] sm:$0xff pattern:$0x73625140]  ;;  %v679_v27 = vld.sshfl [vmem:[#allocation1 + $0x28] sm:$0xff pattern:$0x73625140] }
  0x25   :  { %v92_v28 = vld.sshfl [vmem:[#allocation1 + $0x30] sm:$0xff pattern:$0x73625140]  ;;  %v93_v29 = vld.sshfl [vmem:[#allocation1 + $0x38] sm:$0xff pattern:$0x73625140] }
  0x26   :  { %94 = vst [vmem:[#allocation1] ss:$4 sm:$0xff] %v673_v20  ;;  %v190_v32 = vsel %vm146_vm0, %v92_v28, 0.0  ;;  %v197_v34 = vsel %vm146_vm0, %v93_v29, 0.0  ;;  %v148_v12 = vsel %vm146_vm0, %v86_v22, 0.0  ;;  %v155_v13 = vsel %vm146_vm0, %v87_v23, 0.0 }
  0x27   :  { %95 = vst [vmem:[#allocation1 + $0x20] ss:$4 sm:$0xff] %v675_v21  ;;  %v191_v44 = vadd.f32 %v190_v32, %v189_v31  ;;  %v198_v45 = vadd.f32 %v197_v34, %v196_v33  ;;  %v162_v14 = vsel %vm146_vm0, %v88_v24, 0.0  ;;  %v169_v15 = vsel %vm146_vm0, %v89_v25, 0.0 }
  0x28   :  { %v149_v18 = vadd.f32 %v148_v12, %v147_v60  ;;  %v156_v19 = vadd.f32 %v155_v13, %v154_v61  ;;  %v163_v28 = vadd.f32 %v162_v14, %v161_v62  ;;  %v170_v29 = vadd.f32 %v169_v15, %v168_v63 }
  0x29   :  { %v176_v24 = vsel %vm146_vm0, %v677_v26, 0.0  ;;  %v183_v25 = vsel %vm146_vm0, %v679_v27, 0.0  ;;  %v207_v26 = vmul.f32 %v673_v20, %v673_v20 }
  0x2d   :  { %v96_v36 = vld.sshfl [vmem:[#allocation1] sm:$0xff pattern:$0x73625140]  ;;  %v97_v37 = vld.sshfl [vmem:[#allocation1 + $0x8] sm:$0xff pattern:$0x73625140] }
  0x2e   :  { %v98_v38 = vld.sshfl [vmem:[#allocation1 + $0x10] sm:$0xff pattern:$0x73625140]  ;;  %v99_v39 = vld.sshfl [vmem:[#allocation1 + $0x18] sm:$0xff pattern:$0x73625140] }
  0x2f   :  { %v100_v40 = vld.sshfl [vmem:[#allocation1 + $0x20] sm:$0xff pattern:$0x73625140]  ;;  %v101_v41 = vld.sshfl [vmem:[#allocation1 + $0x28] sm:$0xff pattern:$0x73625140] }
  0x30   :  { %v102_v42 = vld.sshfl [vmem:[#allocation1 + $0x30] sm:$0xff pattern:$0x73625140]  ;;  %v103_v43 = vld.sshfl [vmem:[#allocation1 + $0x38] sm:$0xff pattern:$0x73625140] }
  0x31   :  { %104 = vst [vmem:[#allocation1] ss:$4 sm:$0xff] %v683_v30  ;;  %v192_v46 = vsel %vm146_vm0, %v102_v42, 0.0  ;;  %v199_v47 = vsel %vm146_vm0, %v103_v43, 0.0  ;;  %v150_v22 = vsel %vm146_vm0, %v96_v36, 0.0  ;;  %v157_v23 = vsel %vm146_vm0, %v97_v37, 0.0 }
  0x32   :  { %105 = vst [vmem:[#allocation1 + $0x20] ss:$4 sm:$0xff] %v689_v35  ;;  %v695_v48 = vadd.f32 %v192_v46, %v191_v44  ;;  %v697_v49 = vadd.f32 %v199_v47, %v198_v45  ;;  %v164_v31 = vsel %vm146_vm0, %v98_v38, 0.0  ;;  %v171_v16 = vsel %vm146_vm0, %v99_v39, 0.0 }
  0x33   :  { %v178_v17 = vsel %vm146_vm0, %v100_v40, 0.0  ;;  %v185_v32 = vsel %vm146_vm0, %v101_v41, 0.0  ;;  %v151_v38 = vadd.f32 %v150_v22, %v149_v18  ;;  %v158_v43 = vadd.f32 %v157_v23, %v156_v19 }
  0x34   :  { %v208_v39 = vmul.f32 %v675_v21, %v675_v21  ;;  %v165_v44 = vadd.f32 %v164_v31, %v163_v28  ;;  %v172_v45 = vadd.f32 %v171_v16, %v170_v29  ;;  %v177_v46 = vadd.f32 %v176_v24, %v175_v10 }
  0x35   :  { %v184_v47 = vadd.f32 %v183_v25, %v182_v11 }
  0x36   :  { %v179_v61 = vadd.f32 %v178_v17, %v177_v46 }
  0x37   :  { %v186_v62 = vadd.f32 %v185_v32, %v184_v47 }
  0x38   :  { %v106_v50 = vld.sshfl [vmem:[#allocation1] sm:$0xff pattern:$0x73625140]  ;;  %v107_v51 = vld.sshfl [vmem:[#allocation1 + $0x8] sm:$0xff pattern:$0x73625140] }
  0x39   :  { %v108_v53 = vld.sshfl [vmem:[#allocation1 + $0x10] sm:$0xff pattern:$0x73625140]  ;;  %v109_v54 = vld.sshfl [vmem:[#allocation1 + $0x18] sm:$0xff pattern:$0x73625140] }
  0x3a   :  { %v699_v56 = vld.sshfl [vmem:[#allocation1 + $0x20] sm:$0xff pattern:$0x73625140]  ;;  %v701_v57 = vld.sshfl [vmem:[#allocation1 + $0x28] sm:$0xff pattern:$0x73625140] }
  0x3b   :  { %v703_v58 = vld.sshfl [vmem:[#allocation1 + $0x30] sm:$0xff pattern:$0x73625140]  ;;  %v705_v59 = vld.sshfl [vmem:[#allocation1 + $0x38] sm:$0xff pattern:$0x73625140] }
  0x3c   :  { %219 = vst [vmem:[#allocation1] ss:$4 sm:$0xff] %v203_v52  ;;  %v152_v33 = vsel %vm146_vm0, %v106_v50, 0.0  ;;  %v159_v34 = vsel %vm146_vm0, %v107_v51, 0.0  ;;  %v166_v36 = vsel %vm146_vm0, %v108_v53, 0.0  ;;  %v173_v37 = vsel %vm146_vm0, %v109_v54, 0.0 }
  0x3d   :  { %221 = vst [vmem:[#allocation1 + $0x20] ss:$4 sm:$0xff] %v204_v55  ;;  %v153_v54 = vadd.f32 %v152_v33, %v151_v38  ;;  %v160_v20 = vadd.f32 %v159_v34, %v158_v43  ;;  %v167_v55 = vadd.f32 %v166_v36, %v165_v44  ;;  %v174_v60 = vadd.f32 %v173_v37, %v172_v45 }
  0x3e   :  { %v180_v21 = vsel %vm146_vm0, %v699_v56, 0.0  ;;  %v187_v63 = vsel %vm146_vm0, %v701_v57, 0.0 }
  0x3f   :  { %v348_v11 = vmul.f32 0.25, %v153_v54  ;;  %v349_v57 = vmul.f32 0.25, %v160_v20  ;;  %v350_v19 = vmul.f32 0.25, %v167_v55  ;;  %v181_v29 = vadd.f32 %v180_v21, %v179_v61 }
  0x41   :  { %v352_v33 = vmul.f32 0.25, %v181_v29  ;;  %v364_v55 = vmul.f32 %v348_v11, %v348_v11  ;;  %v366_v61 = vmul.f32 %v350_v19, %v350_v19 }
  0x43   :  { %v222_v1 = vld.sshfl [vmem:[#allocation1] sm:$0xff pattern:$0x73625140]  ;;  %v223_v2 = vld.sshfl [vmem:[#allocation1 + $0x8] sm:$0xff pattern:$0x73625140] }
  0x44   :  { %v224_v4 = vld.sshfl [vmem:[#allocation1 + $0x10] sm:$0xff pattern:$0x73625140]  ;;  %v225_v5 = vld.sshfl [vmem:[#allocation1 + $0x18] sm:$0xff pattern:$0x73625140] }
  0x45   :  { %v226_v6 = vld.sshfl [vmem:[#allocation1 + $0x20] sm:$0xff pattern:$0x73625140]  ;;  %v227_v7 = vld.sshfl [vmem:[#allocation1 + $0x28] sm:$0xff pattern:$0x73625140] }
  0x46   :  { %v228_v8 = vld.sshfl [vmem:[#allocation1 + $0x30] sm:$0xff pattern:$0x73625140]  ;;  %v229_v9 = vld.sshfl [vmem:[#allocation1 + $0x38] sm:$0xff pattern:$0x73625140] }
  0x47   :  { %230 = vst [vmem:[#allocation1] ss:$4 sm:$0xff] %v205_v0  ;;  %v194_v0 = vsel %vm146_vm0, %v703_v58, 0.0  ;;  %v292_v12 = vsel %vm146_vm0, %v222_v1, 0.0  ;;  %v299_v13 = vsel %vm146_vm0, %v223_v2, 0.0  ;;  %v306_v14 = vsel %vm146_vm0, %v224_v4, 0.0 }
  0x48   :  { %231 = vst [vmem:[#allocation1 + $0x20] ss:$4 sm:$0xff] %v206_v3  ;;  %v201_v3 = vsel %vm146_vm0, %v705_v59, 0.0  ;;  %v313_v15 = vsel %vm146_vm0, %v225_v5, 0.0  ;;  %v320_v10 = vsel %vm146_vm0, %v226_v6, 0.0  ;;  %v327_v56 = vsel %vm146_vm0, %v227_v7, 0.0 }
  0x49   :  { %v334_v18 = vsel %vm146_vm0, %v228_v8, 0.0  ;;  %v341_v58 = vsel %vm146_vm0, %v229_v9, 0.0  ;;  %v351_v59 = vmul.f32 0.25, %v174_v60  ;;  %v209_v1 = vmul.f32 %v683_v30, %v683_v30 }
  0x4a   :  { %v210_v4 = vmul.f32 %v689_v35, %v689_v35  ;;  %v188_v7 = vadd.f32 %v187_v63, %v186_v62  ;;  %v195_v22 = vadd.f32 %v194_v0, %v695_v48  ;;  %v202_v8 = vadd.f32 %v201_v3, %v697_v49 }
  0x4b   :  { %v365_v60 = vmul.f32 %v349_v57, %v349_v57  ;;  %v367_v62 = vmul.f32 %v351_v59, %v351_v59 }
  0x4c   :  { %v353_v34 = vmul.f32 0.25, %v188_v7  ;;  %v354_v36 = vmul.f32 0.25, %v195_v22  ;;  %v355_v37 = vmul.f32 0.25, %v202_v8 }
  0x4e   :  { %v232_v27 = vld.sshfl [vmem:[#allocation1] sm:$0xff pattern:$0x73625140]  ;;  %v233_v42 = vld.sshfl [vmem:[#allocation1 + $0x8] sm:$0xff pattern:$0x73625140] }
  0x4f   :  { %v234_v40 = vld.sshfl [vmem:[#allocation1 + $0x10] sm:$0xff pattern:$0x73625140]  ;;  %v235_v41 = vld.sshfl [vmem:[#allocation1 + $0x18] sm:$0xff pattern:$0x73625140] }
  0x50   :  { %v236_v50 = vld.sshfl [vmem:[#allocation1 + $0x20] sm:$0xff pattern:$0x73625140]  ;;  %v237_v51 = vld.sshfl [vmem:[#allocation1 + $0x28] sm:$0xff pattern:$0x73625140] }
  0x51   :  { %v238_v52 = vld.sshfl [vmem:[#allocation1 + $0x30] sm:$0xff pattern:$0x73625140]  ;;  %v239_v53 = vld.sshfl [vmem:[#allocation1 + $0x38] sm:$0xff pattern:$0x73625140] }
  0x52   :  { %240 = vst [vmem:[#allocation1] ss:$4 sm:$0xff] %v207_v26  ;;  %v293_v30 = vsel %vm146_vm0, %v232_v27, 0.0  ;;  %v300_v31 = vsel %vm146_vm0, %v233_v42, 0.0  ;;  %v307_v16 = vsel %vm146_vm0, %v234_v40, 0.0  ;;  %v314_v35 = vsel %vm146_vm0, %v235_v41, 0.0 }
  0x53   :  { %241 = vst [vmem:[#allocation1 + $0x20] ss:$4 sm:$0xff] %v208_v39  ;;  %v321_v17 = vsel %vm146_vm0, %v236_v50, 0.0  ;;  %v328_v48 = vsel %vm146_vm0, %v237_v51, 0.0  ;;  %v335_v49 = vsel %vm146_vm0, %v238_v52, 0.0  ;;  %v342_v32 = vsel %vm146_vm0, %v239_v53, 0.0 }
  0x54   :  { %v294_v26 = vadd.f32 %v293_v30, %v292_v12  ;;  %v301_v27 = vadd.f32 %v300_v31, %v299_v13  ;;  %v308_v42 = vadd.f32 %v307_v16, %v306_v14  ;;  %v315_v38 = vadd.f32 %v314_v35, %v313_v15 }
  0x55   :  { %v322_v43 = vadd.f32 %v321_v17, %v320_v10  ;;  %v329_v39 = vadd.f32 %v328_v48, %v327_v56  ;;  %v336_v40 = vadd.f32 %v335_v49, %v334_v18  ;;  %v343_v41 = vadd.f32 %v342_v32, %v341_v58 }
  0x56   :  { %v368_v10 = vmul.f32 %v352_v33, %v352_v33  ;;  %v369_v56 = vmul.f32 %v353_v34, %v353_v34  ;;  %v370_v18 = vmul.f32 %v354_v36, %v354_v36  ;;  %v371_v58 = vmul.f32 %v355_v37, %v355_v37 }
  0x59   :  { %v242_v2 = vld.sshfl [vmem:[#allocation1] sm:$0xff pattern:$0x73625140]  ;;  %v243_v28 = vld.sshfl [vmem:[#allocation1 + $0x8] sm:$0xff pattern:$0x73625140] }
  0x5a   :  { %v244_v5 = vld.sshfl [vmem:[#allocation1 + $0x10] sm:$0xff pattern:$0x73625140]  ;;  %v245_v6 = vld.sshfl [vmem:[#allocation1 + $0x18] sm:$0xff pattern:$0x73625140] }
  0x5b   :  { %v246_v23 = vld.sshfl [vmem:[#allocation1 + $0x20] sm:$0xff pattern:$0x73625140]  ;;  %v247_v9 = vld.sshfl [vmem:[#allocation1 + $0x28] sm:$0xff pattern:$0x73625140] }
  0x5c   :  { %v248_v24 = vld.sshfl [vmem:[#allocation1 + $0x30] sm:$0xff pattern:$0x73625140]  ;;  %v249_v25 = vld.sshfl [vmem:[#allocation1 + $0x38] sm:$0xff pattern:$0x73625140] }
  0x5d   :  { %250 = vst [vmem:[#allocation1] ss:$4 sm:$0xff] %v209_v1  ;;  %v295_v44 = vsel %vm146_vm0, %v242_v2, 0.0  ;;  %v302_v45 = vsel %vm146_vm0, %v243_v28, 0.0  ;;  %v309_v46 = vsel %vm146_vm0, %v244_v5, 0.0  ;;  %v316_v47 = vsel %vm146_vm0, %v245_v6, 0.0 }
  0x5e   :  { %251 = vst [vmem:[#allocation1 + $0x20] ss:$4 sm:$0xff] %v210_v4  ;;  %v323_v50 = vsel %vm146_vm0, %v246_v23, 0.0  ;;  %v330_v51 = vsel %vm146_vm0, %v247_v9, 0.0  ;;  %v337_v52 = vsel %vm146_vm0, %v248_v24, 0.0  ;;  %v344_v53 = vsel %vm146_vm0, %v249_v25, 0.0 }
  0x5f   :  { %v296_v0 = vadd.f32 %v295_v44, %v294_v26  ;;  %v303_v3 = vadd.f32 %v302_v45, %v301_v27  ;;  %v310_v12 = vadd.f32 %v309_v46, %v308_v42  ;;  %v317_v13 = vadd.f32 %v316_v47, %v315_v38 }
  0x60   :  { %v324_v28 = vadd.f32 %v323_v50, %v322_v43  ;;  %v331_v4 = vadd.f32 %v330_v51, %v329_v39  ;;  %v338_v11 = vadd.f32 %v337_v52, %v336_v40  ;;  %v345_v57 = vadd.f32 %v344_v53, %v343_v41 }
  0x64   :  { %v252_v54 = vld.sshfl [vmem:[#allocation1] sm:$0xff pattern:$0x73625140]  ;;  %v253_v20 = vld.sshfl [vmem:[#allocation1 + $0x8] sm:$0xff pattern:$0x73625140] }
  0x65   :  { %v254_v21 = vld.sshfl [vmem:[#allocation1 + $0x10] sm:$0xff pattern:$0x73625140]  ;;  %v255_v63 = vld.sshfl [vmem:[#allocation1 + $0x18] sm:$0xff pattern:$0x73625140] }
  0x66   :  { %v256_v14 = vld.sshfl [vmem:[#allocation1 + $0x20] sm:$0xff pattern:$0x73625140]  ;;  %v257_v15 = vld.sshfl [vmem:[#allocation1 + $0x28] sm:$0xff pattern:$0x73625140] }
  0x67   :  { %v258_v1 = vld.sshfl [vmem:[#allocation1 + $0x30] sm:$0xff pattern:$0x73625140]  ;;  %v259_v2 = vld.sshfl [vmem:[#allocation1 + $0x38] sm:$0xff pattern:$0x73625140] }
  0x68   :  { %v297_v19 = vsel %vm146_vm0, %v252_v54, 0.0  ;;  %v304_v59 = vsel %vm146_vm0, %v253_v20, 0.0  ;;  %v311_v5 = vsel %vm146_vm0, %v254_v21, 0.0  ;;  %v318_v6 = vsel %vm146_vm0, %v255_v63, 0.0 }
  0x69   :  { %v298_v29 = vadd.f32 %v297_v19, %v296_v0  ;;  %v305_v7 = vadd.f32 %v304_v59, %v303_v3  ;;  %v312_v22 = vadd.f32 %v311_v5, %v310_v12  ;;  %v319_v8 = vadd.f32 %v318_v6, %v317_v13 }
  0x6a   :  { %v325_v23 = vsel %vm146_vm0, %v256_v14, 0.0  ;;  %v332_v9 = vsel %vm146_vm0, %v257_v15, 0.0  ;;  %v339_v24 = vsel %vm146_vm0, %v258_v1, 0.0  ;;  %v346_v25 = vsel %vm146_vm0, %v259_v2, 0.0 }
  0x6b   :  { %v326_v30 = vadd.f32 %v325_v23, %v324_v28  ;;  %v333_v31 = vadd.f32 %v332_v9, %v331_v4  ;;  %v340_v16 = vadd.f32 %v339_v24, %v338_v11  ;;  %v347_v35 = vadd.f32 %v346_v25, %v345_v57 }
  0x6c   :  { %v356_v17 = vmul.f32 0.25, %v298_v29  ;;  %v357_v48 = vmul.f32 0.25, %v305_v7  ;;  %v358_v49 = vmul.f32 0.25, %v312_v22  ;;  %v359_v32 = vmul.f32 0.25, %v319_v8 }
  0x6d   :  { %v360_v33 = vmul.f32 0.25, %v326_v30  ;;  %v361_v34 = vmul.f32 0.25, %v333_v31  ;;  %v362_v36 = vmul.f32 0.25, %v340_v16  ;;  %v363_v37 = vmul.f32 0.25, %v347_v35 }
  0x6e   :  { %v372_v26 = vsub.f32 %v356_v17, %v364_v55  ;;  %v373_v27 = vsub.f32 %v357_v48, %v365_v60  ;;  %v374_v42 = vsub.f32 %v358_v49, %v366_v61  ;;  %v375_v38 = vsub.f32 %v359_v32, %v367_v62 }
  0x6f   :  { %v376_v43 = vsub.f32 %v360_v33, %v368_v10  ;;  %v377_v39 = vsub.f32 %v361_v34, %v369_v56  ;;  %v378_v40 = vsub.f32 %v362_v36, %v370_v18  ;;  %v379_v41 = vsub.f32 %v363_v37, %v371_v58 }
  0x70   :  { %v380_v44 = vmax.f32 %v372_v26, 0.0  ;;  %v381_v45 = vmax.f32 %v373_v27, 0.0  ;;  %v382_v46 = vmax.f32 %v374_v42, 0.0  ;;  %v383_v47 = vmax.f32 %v375_v38, 0.0 }
  0x71   :  { %v384_v50 = vmax.f32 %v376_v43, 0.0  ;;  %v385_v51 = vmax.f32 %v377_v39, 0.0  ;;  %v386_v52 = vmax.f32 %v378_v40, 0.0  ;;  %v387_v55 = vmax.f32 %v379_v41, 0.0 }
  0x72   :  { %v787_v53 = vadd.f32 1e-08, %v380_v44  ;;  %v789_v54 = vadd.f32 1e-08, %v381_v45  ;;  %v791_v20 = vadd.f32 1e-08, %v382_v46 }
  0x73   :  { %v793_v60 = vadd.f32 1e-08, %v383_v47  ;;  %v795_v61 = vadd.f32 1e-08, %v384_v50  ;;  %v798_v62 = vadd.f32 1e-08, %v385_v51 }
  0x74   :  { %570 = vrsqrt.f32 %v787_v53  ;;  %v801_v21 = vadd.f32 1e-08, %v386_v52  ;;  %v804_v63 = vadd.f32 1e-08, %v387_v55  ;;  %vm403_vm1 = vcmp.eq.f32.partialorder %v787_v53, inf }
  0x75   :  { %572 = vrsqrt.f32 %v789_v54  ;;  %v406_v14 = vand.u32 2147483648, %v787_v53  ;;  %vm405_vm2 = vcmp.eq.f32.partialorder %v787_v53, 0.0  ;;  %vm415_vm3 = vcmp.eq.f32.partialorder %v789_v54, inf }
  0x76   :  { %574 = vrsqrt.f32 %v791_v20  ;;  %v418_v18 = vand.u32 2147483648, %v789_v54  ;;  %vm417_vm4 = vcmp.eq.f32.partialorder %v789_v54, 0.0  ;;  %vm427_vm5 = vcmp.eq.f32.partialorder %v791_v20, inf }
  0x77   :  { %576 = vrsqrt.f32 %v793_v60  ;;  %v430_v28 = vand.u32 2147483648, %v791_v20  ;;  %v442_v11 = vand.u32 2147483648, %v793_v60  ;;  %vm429_vm6 = vcmp.eq.f32.partialorder %v791_v20, 0.0 }
  0x78   :  { %578 = vrsqrt.f32 %v795_v61  ;;  %vm439_vm7 = vcmp.eq.f32.partialorder %v793_v60, inf  ;;  %v454_v6 = vand.u32 2147483648, %v795_v61  ;;  %vm441_vm8 = vcmp.eq.f32.partialorder %v793_v60, 0.0 }
  0x79   :  { %580 = vrsqrt.f32 %v798_v62  ;;  %vm451_vm9 = vcmp.eq.f32.partialorder %v795_v61, inf  ;;  %v466_v23 = vand.u32 2147483648, %v798_v62  ;;  %vm463_vm10 = vcmp.eq.f32.partialorder %v798_v62, inf }
  0x7a   :  { %v571_v0 = vpop.eup %570  ;;  %582 = vrsqrt.f32 %v801_v21  ;;  %vm453_vm11 = vcmp.eq.f32.partialorder %v795_v61, 0.0  ;;  %vm475_vm12 = vcmp.eq.f32.partialorder %v801_v21, inf  ;;  %vm465_vm13 = vcmp.eq.f32.partialorder %v798_v62, 0.0 }
  0x7b   :  { %v573_v3 = vpop.eup %572  ;;  %v397_v12 = vmul.f32 %v571_v0, %v787_v53  ;;  %584 = vrsqrt.f32 %v804_v63  ;;  %vm487_vm14 = vcmp.eq.f32.partialorder %v804_v63, inf  ;;  %vm477_vm15 = vcmp.eq.f32.partialorder %v801_v21, 0.0 }
  0x7c   :  { %v575_v13 = vpop.eup %574  ;;  %v409_v15 = vmul.f32 %v573_v3, %v789_v54 }
  0x7d   :  { %v577_v10 = vpop.eup %576  ;;  %v398_v56 = vmul.f32 %v571_v0, %v397_v12  ;;  %v421_v58 = vmul.f32 %v575_v13, %v791_v20 }
  0x7e   :  { %v579_v1 = vpop.eup %578  ;;  %v410_v2 = vmul.f32 %v573_v3, %v409_v15  ;;  %v433_v4 = vmul.f32 %v577_v10, %v793_v60 }
  0x7f   :  { %v581_v57 = vpop.eup %580  ;;  %v399_v19 = vmul.f32 0.5, %v398_v56  ;;  %v422_v59 = vmul.f32 %v575_v13, %v421_v58  ;;  %v445_v5 = vmul.f32 %v579_v1, %v795_v61 }
  0x80   :  { %v583_v29 = vpop.eup %582  ;;  %v411_v7 = vmul.f32 0.5, %v410_v2  ;;  %v434_v22 = vmul.f32 %v577_v10, %v433_v4  ;;  %v457_v8 = vmul.f32 %v581_v57, %v798_v62 }
  0x81   :  { %v585_v9 = vpop.eup %584  ;;  %v400_v24 = vsub.f32 1.5, %v399_v19  ;;  %v423_v25 = vmul.f32 0.5, %v422_v59  ;;  %v446_v30 = vmul.f32 %v579_v1, %v445_v5  ;;  %v469_v31 = vmul.f32 %v583_v29, %v801_v21 }
  0x82   :  { %v412_v16 = vsub.f32 1.5, %v411_v7  ;;  %v435_v35 = vmul.f32 0.5, %v434_v22  ;;  %v458_v17 = vmul.f32 %v581_v57, %v457_v8  ;;  %v481_v48 = vmul.f32 %v585_v9, %v804_v63 }
  0x83   :  { %v401_v49 = vmul.f32 %v571_v0, %v400_v24  ;;  %v424_v32 = vsub.f32 1.5, %v423_v25  ;;  %v447_v33 = vmul.f32 0.5, %v446_v30  ;;  %v470_v34 = vmul.f32 %v583_v29, %v469_v31 }
  0x84   :  { %v413_v36 = vmul.f32 %v573_v3, %v412_v16  ;;  %v436_v37 = vsub.f32 1.5, %v435_v35  ;;  %v459_v26 = vmul.f32 0.5, %v458_v17  ;;  %v482_v27 = vmul.f32 %v585_v9, %v481_v48 }
  0x85   :  { %v402_v42 = vmul.f32 %v401_v49, %v787_v53  ;;  %v425_v38 = vmul.f32 %v575_v13, %v424_v32  ;;  %v448_v43 = vsub.f32 1.5, %v447_v33  ;;  %v471_v39 = vmul.f32 0.5, %v470_v34 }
  0x86   :  { %v414_v40 = vmul.f32 %v413_v36, %v789_v54  ;;  %v437_v41 = vmul.f32 %v577_v10, %v436_v37  ;;  %v460_v44 = vsub.f32 1.5, %v459_v26  ;;  %v483_v45 = vmul.f32 0.5, %v482_v27 }
  0x87   :  { %v404_v46 = vsel %vm403_vm1, %v787_v53, %v402_v42  ;;  %v426_v47 = vmul.f32 %v425_v38, %v791_v20  ;;  %v449_v50 = vmul.f32 %v579_v1, %v448_v43  ;;  %v472_v51 = vsub.f32 1.5, %v471_v39 }
  0x88   :  { %v407_v52 = vsel %vm405_vm2, %v406_v14, %v404_v46  ;;  %v416_v55 = vsel %vm415_vm3, %v789_v54, %v414_v40  ;;  %v438_v0 = vmul.f32 %v437_v41, %v793_v60  ;;  %v461_v3 = vmul.f32 %v581_v57, %v460_v44 }
  0x89   :  { %v419_v12 = vsel %vm417_vm4, %v418_v18, %v416_v55  ;;  %v428_v13 = vsel %vm427_vm5, %v791_v20, %v426_v47  ;;  %v450_v15 = vmul.f32 %v449_v50, %v795_v61  ;;  %v473_v10 = vmul.f32 %v583_v29, %v472_v51 }
  0x8a   :  { %v431_v53 = vsel %vm429_vm6, %v430_v28, %v428_v13  ;;  %v440_v14 = vsel %vm439_vm7, %v793_v60, %v438_v0  ;;  %v462_v56 = vmul.f32 %v461_v3, %v798_v62  ;;  %v484_v58 = vsub.f32 1.5, %v483_v45 }
  0x8b   :  { %v443_v54 = vsel %vm441_vm8, %v442_v11, %v440_v14  ;;  %v452_v18 = vsel %vm451_vm9, %v795_v61, %v450_v15  ;;  %v474_v1 = vmul.f32 %v473_v10, %v801_v21  ;;  %v492_v2 = vsel %vm146_vm0, %v407_v52, 0.0 }
  0x8c   :  { %v464_v20 = vsel %vm463_vm10, %v798_v62, %v462_v56  ;;  %v478_v28 = vand.u32 2147483648, %v801_v21  ;;  %v485_v4 = vmul.f32 %v585_v9, %v484_v58  ;;  %v493_v57 = vsel %vm146_vm0, %v419_v12, 0.0 }
  0x8d   :  { %v455_v60 = vsel %vm453_vm11, %v454_v6, %v452_v18  ;;  %v494_v11 = vadd.f32 %v493_v57, %v492_v2  ;;  %v495_v19 = vsel %vm146_vm0, %v431_v53, 0.0  ;;  %v476_v59 = vsel %vm475_vm12, %v801_v21, %v474_v1 }
  0x8e   :  { %v486_v5 = vmul.f32 %v485_v4, %v804_v63  ;;  %v497_v29 = vsel %vm146_vm0, %v443_v54, 0.0  ;;  %v467_v61 = vsel %vm465_vm13, %v466_v23, %v464_v20  ;;  %v490_v6 = vand.u32 2147483648, %v804_v63 }
  0x8f   :  { %v496_v7 = vadd.f32 %v495_v19, %v494_v11  ;;  %vm489_vm1 = vcmp.eq.f32.partialorder %v804_v63, 0.0  ;;  %v499_v8 = vsel %vm146_vm0, %v455_v60, 0.0  ;;  %v479_v9 = vsel %vm477_vm15, %v478_v28, %v476_v59 }
  0x90   :  { %v488_v22 = vsel %vm487_vm14, %v804_v63, %v486_v5  ;;  %v501_v24 = vsel %vm146_vm0, %v467_v61, 0.0  ;;  %v503_v31 = vsel %vm146_vm0, %v479_v9, 0.0  ;;  %v645_v17 = vmov 1024.0  }
  0x91   :  { %v498_v21 = vadd.f32 %v497_v29, %v496_v7  ;;  %v491_v25 = vsel %vm489_vm1, %v490_v6, %v488_v22  ;;  %586 = vrcp.f32 %v645_v17  ;;  %v646_v34 = vmov 269488144  }
  0x92   :  { %v505_v62 = vsel %vm146_vm0, %v491_v25, 0.0  ;;  %v519_v36 = vunpack.c.l.s4 %v646_v34 }
  0x93   :  { %v500_v30 = vadd.f32 %v499_v8, %v498_v21 }
  0x94   :  { %v520_v26 = vunpack.c.0.s8 %v519_v36 }
  0x95   :  { %v502_v16 = vadd.f32 %v501_v24, %v500_v30 }
  0x97   :  { %v504_v23 = vadd.f32 %v503_v31, %v502_v16  ;;  %v587_v48 = vpop.eup %586 }
  0x98   :  { %v510_v63 = vmul.f32 1024.0, %v587_v48  ;;  %vm514_vm2 = vweird.f32 %v587_v48 }
  0x99   :  { %v506_v35 = vadd.f32 %v505_v62, %v504_v23 }
  0x9a   :  { %v511_v49 = vsub.f32 1.0, %v510_v63 }
  0x9b   :  { %507 = vadd.xlane.f32.xlu0 %v506_v35 }
  0x9c   :  { %v512_v32 = vmul.f32 %v587_v48, %v511_v49 }
  0x9e   :  { %v513_v33 = vadd.f32 %v587_v48, %v512_v32 }
  0xa0   :  { %v515_v37 = vsel %vm514_vm2, %v587_v48, %v513_v33 }
 0x10e   :  { %v508_v27 = vpop.xlane.xlu0 %507 }
 0x10f   :  { %v516_v42 = vmul.f32 %v515_v37, %v508_v27 }
 0x111   :  { %v521_v38 = vperm.slane %v516_v42, %v520_v26 }
 0x113   :  { %523 = vst [vmem:[#allocation6 + $0x10] sm:$0xf] %v521_v38 }
 0x114   :  { %524 = vst [vmem:[#allocation6 + $0x24] sm:$0xf] %v521_v38 }
 0x115   :  { %525 = vst [vmem:[#allocation6 + $0x38] sm:$0xf] %v521_v38 }
 0x116   :  { %526 = vst [vmem:[#allocation6 + $0x4c] sm:$0xf] %v521_v38 }
 0x117   :  { %638 = dma.done.wait [#allocation2], 1024 }
 0x118   :  { %639 = vsyncadd [#allocation2], 4294966272  ;;  %s538_s14 = sshll.u32 %s901_s1, 4  ;;  %s647_s15 = smov [#allocation6]   ;;  %s539_s14 = int_to_ptr.hbm [resolvable:$true] %s538_s14 }
 0x119   :  { %s536_s16 = sshll.u32 %s647_s15, 4  ;;  %s648_s17 = smov 320   ;;  %s537_s16 = int_to_ptr.vmem [resolvable:$true] %s536_s16 }
 0x11a   :  { %s649_s18 = smov 20  }
 0x11b   :  { %544 = dma.vmem_to_hbm [thread:$0]  %s537_s16, 1280, %s539_s14, [#allocation5], %s648_s17, %s648_s17, %s649_s18  }
 0x11c   :  { %640 = dma.done.wait [#allocation5], 1280  }
 0x11d   :  { %641 = vsyncadd [#allocation5], 4294966016 }
 0x11e   :  { %549 = vsyncpa [#allocation4], 1 }
 0x11f   :  { %550 = vsyncpa [#allocation5], 1 }
 0x120   :  { %551 = vsyncmov [#allocation2] }
 0x123   :  { %s552_s19 = vpop.sfrf %551 }
 0x124   :  { %p561_p0 = scmp.ne.s32.totalorder %s552_s19, 0 }
 0x126   :  { %556 = shalt.err (%p561_p0)  }

</bundles_post_ra>
